<compile_context>
chip_gen: v7x
topology: tpu7x:2x2x1
jax: 0.10.0
libtpu: 0.0.40
codegen_flags: <defaults>
</compile_context>

<pallas_src>
import math

import jax
import jax.numpy as jnp
from jax.experimental import pallas as pl
from jax.experimental.pallas import tpu as pltpu

# ----------------------------- configuration --------------------------------
IN_CHANNEL = 1          # module default
OUT_CHANNEL = 128       # constructor arg; 128 keeps the output lane-dense
KERNEL_SIZE = 24        # fixed by the module
BATCH = 2
LENGTH = 32             # input time length (>= 24); Lout = LENGTH - 23
BN_EPS = 1e-5


# ----------------------------- kernel ----------------------------------------
def _gelu(x):
    # exact GELU (PyTorch nn.GELU default, erf-based), f32
    return 0.5 * x * (1.0 + jax.lax.erf(x * (1.0 / math.sqrt(2.0))))


def _ser_embed_kernel(xc_ref, w1_ref, b1_ref, s1_ref, t1_ref,
                      w2_ref, b2_ref, s2_ref, t2_ref, o_ref):
    # xc: (rows, Cin*K) f32 | w1: (Cin*K, C) bf16 | w2: (C, C) bf16 (pre-transposed)
    h = jnp.dot(xc_ref[...].astype(jnp.bfloat16), w1_ref[...],
                preferred_element_type=jnp.float32) + b1_ref[...]
    h = _gelu(h)
    h = h * s1_ref[...] + t1_ref[...]                       # BatchNorm1d #1 (eval, folded)
    h = jnp.dot(h.astype(jnp.bfloat16), w2_ref[...],
                preferred_element_type=jnp.float32) + b2_ref[...]
    h = _gelu(h)
    o_ref[...] = h * s2_ref[...] + t2_ref[...]              # BatchNorm1d #2 (eval, folded)


# ----------------------------- wrapper ----------------------------------------
def _im2col(x, k):
    # x: (B, Cin, L) -> (B*Lout, Cin*k), flattened in Conv1d's (c, k) contraction order
    B, Cin, L = x.shape
    Lout = L - k + 1
    idx = jnp.arange(Lout)[:, None] + jnp.arange(k)[None, :]    # (Lout, k)
    windows = x[:, :, idx]                                      # (B, Cin, Lout, k)
    windows = jnp.transpose(windows, (0, 2, 1, 3))              # (B, Lout, Cin, k)
    return windows.reshape(B * Lout, Cin * k), Lout


def ser_embed_apply(x, params):
    """x: (B, Cin, L) float32 -> (B, C, L - 23) float32 (matches PyTorch NCW)."""
    B, _, _ = x.shape
    C = params["w1"].shape[1]
    xc, Lout = _im2col(x, KERNEL_SIZE)
    rows = B * Lout
    out = pl.pallas_call(
        _ser_embed_kernel,
        out_shape=jax.ShapeDtypeStruct((rows, C), jnp.float32),
        compiler_params=pltpu.CompilerParams(vmem_limit_bytes=32 * 1024 * 1024),
    )(xc,
      params["w1"], params["b1"], params["bn1_scale"], params["bn1_shift"],
      params["w2"], params["b2"], params["bn2_scale"], params["bn2_shift"])
    # (B*Lout, C) -> (B, C, Lout): layout plumbing outside the kernel
    return jnp.transpose(out.reshape(B, Lout, C), (0, 2, 1))


# ----------------------------- parameters -------------------------------------
def _fold_bn(gamma, beta, mean, var, eps=BN_EPS):
    scale = gamma / jnp.sqrt(var + eps)
    return scale, beta - mean * scale


def init_params(key, cin=IN_CHANNEL, c=OUT_CHANNEL, k=KERNEL_SIZE):
    ks = jax.random.split(key, 12)
    s = 0.02
    nrm = lambda kk, shape: (s * jax.random.normal(kk, shape)).astype(jnp.float32)

    # Conv1d(Cin, C, k=24) + BatchNorm1d(C)
    w1 = nrm(ks[0], (c, cin, k))                                   # PyTorch (O, I, K)
    b1 = nrm(ks[1], (1, c))
    g1 = 1.0 + nrm(ks[2], (1, c)); be1 = nrm(ks[3], (1, c))
    m1 = nrm(ks[4], (1, c)); v1 = 1.0 + jnp.abs(nrm(ks[5], (1, c)))

    # Conv1d(C, C, k=1) + BatchNorm1d(C)
    w2 = nrm(ks[6], (c, c, 1))
    b2 = nrm(ks[7], (1, c))
    g2 = 1.0 + nrm(ks[8], (1, c)); be2 = nrm(ks[9], (1, c))
    m2 = nrm(ks[10], (1, c)); v2 = 1.0 + jnp.abs(nrm(ks[11], (1, c)))

    s1, t1 = _fold_bn(g1, be1, m1, v1)
    s2, t2 = _fold_bn(g2, be2, m2, v2)

    kernel_params = {
        # pre-transposed, bf16 MXU operands (in_features, out_features)
        "w1": w1.reshape(c, cin * k).T.astype(jnp.bfloat16),
        "b1": b1, "bn1_scale": s1, "bn1_shift": t1,
        "w2": w2[:, :, 0].T.astype(jnp.bfloat16),
        "b2": b2, "bn2_scale": s2, "bn2_shift": t2,
    }
    raw = {"w1": w1, "b1": b1, "g1": g1, "be1": be1, "m1": m1, "v1": v1,
           "w2": w2, "b2": b2, "g2": g2, "be2": be2, "m2": m2, "v2": v2}
    return kernel_params, raw


# ----------------------------- f32 reference -----------------------------------
def ser_embed_reference(x, raw):
    def bn(y, g, be, m, v):
        g, be, m, v = (a.reshape(1, -1, 1) for a in (g, be, m, v))
        return (y - m) / jnp.sqrt(v + BN_EPS) * g + be

    dn = ("NCH", "OIH", "NCH")
    y = jax.lax.conv_general_dilated(x, raw["w1"], window_strides=(1,),
                                     padding="VALID", dimension_numbers=dn)
    y = y + raw["b1"].reshape(1, -1, 1)
    y = bn(_gelu(y), raw["g1"], raw["be1"], raw["m1"], raw["v1"])
    y = jax.lax.conv_general_dilated(y, raw["w2"], window_strides=(1,),
                                     padding="VALID", dimension_numbers=dn)
    y = y + raw["b2"].reshape(1, -1, 1)
    return bn(_gelu(y), raw["g2"], raw["be2"], raw["m2"], raw["v2"])


# --------------------------------- main -----------------------------------------
if __name__ == "__main__":
    key = jax.random.PRNGKey(0)
    k_param, k_x = jax.random.split(key)
    params, raw = init_params(k_param)

    x = jax.random.normal(k_x, (BATCH, IN_CHANNEL, LENGTH), jnp.float32)

    out = ser_embed_apply(x, params)
    out = jax.block_until_ready(out)

    lout = LENGTH - KERNEL_SIZE + 1
    assert out.shape == (BATCH, OUT_CHANNEL, lout) and out.dtype == jnp.float32

    ref = jax.block_until_ready(ser_embed_reference(x, raw))
    max_err = float(jnp.max(jnp.abs(out - ref)))
    assert max_err < 2e-2, f"max abs error {max_err}"

    print("KERNEL_OK")
</pallas_src>

<mosaic_0001>
module attributes {stable_mosaic.version = 11 : i64} {
  func.func @_ser_embed_kernel(%arg0: memref<18x24xf32, #tpu.memory_space<vmem>>, %arg1: memref<24x128xbf16, #tpu.memory_space<vmem>>, %arg2: memref<1x128xf32, #tpu.memory_space<vmem>>, %arg3: memref<1x128xf32, #tpu.memory_space<vmem>>, %arg4: memref<1x128xf32, #tpu.memory_space<vmem>>, %arg5: memref<128x128xbf16, #tpu.memory_space<vmem>>, %arg6: memref<1x128xf32, #tpu.memory_space<vmem>>, %arg7: memref<1x128xf32, #tpu.memory_space<vmem>>, %arg8: memref<1x128xf32, #tpu.memory_space<vmem>>, %arg9: memref<18x128xf32, #tpu.memory_space<vmem>>) attributes {dimension_semantics = [], scalar_prefetch = 0 : i64, scratch_operands = 0 : i64, tpu.core_type = #tpu.core_type<tc>} {
    %c0 = arith.constant 0 : index
    %c0_0 = arith.constant 0 : index
    %0 = vector.load %arg0[%c0, %c0_0] : memref<18x24xf32, #tpu.memory_space<vmem>>, vector<18x24xf32>
    %1 = arith.truncf %0 : vector<18x24xf32> to vector<18x24xbf16>
    %c0_1 = arith.constant 0 : index
    %c0_2 = arith.constant 0 : index
    %2 = vector.load %arg1[%c0_1, %c0_2] : memref<24x128xbf16, #tpu.memory_space<vmem>>, vector<24x128xbf16>
    %cst = arith.constant dense<0.000000e+00> : vector<18x128xf32>
    %3 = tpu.matmul %1, %2, %cst {dimension_numbers = #tpu.dot_dimension_numbers<[1], [0], [0], [1], [0, 0, 1, 1], [], []>} : vector<18x24xbf16>, vector<24x128xbf16>, vector<18x128xf32> -> vector<18x128xf32>
    %c0_3 = arith.constant 0 : index
    %c0_4 = arith.constant 0 : index
    %4 = vector.load %arg2[%c0_3, %c0_4] : memref<1x128xf32, #tpu.memory_space<vmem>>, vector<1x128xf32>
    %5 = vector.broadcast %4 : vector<1x128xf32> to vector<18x128xf32>
    %6 = arith.addf %3, %5 : vector<18x128xf32>
    %cst_5 = arith.constant 5.000000e-01 : f32
    %7 = vector.broadcast %cst_5 : f32 to vector<18x128xf32>
    %8 = arith.mulf %7, %6 : vector<18x128xf32>
    %cst_6 = arith.constant 0.707106769 : f32
    %9 = vector.broadcast %cst_6 : f32 to vector<18x128xf32>
    %10 = arith.mulf %6, %9 : vector<18x128xf32>
    %11 = math.erf %10 : vector<18x128xf32>
    %cst_7 = arith.constant 1.000000e+00 : f32
    %12 = vector.broadcast %cst_7 : f32 to vector<18x128xf32>
    %13 = arith.addf %12, %11 : vector<18x128xf32>
    %14 = arith.mulf %8, %13 : vector<18x128xf32>
    %c0_8 = arith.constant 0 : index
    %c0_9 = arith.constant 0 : index
    %15 = vector.load %arg3[%c0_8, %c0_9] : memref<1x128xf32, #tpu.memory_space<vmem>>, vector<1x128xf32>
    %16 = vector.broadcast %15 : vector<1x128xf32> to vector<18x128xf32>
    %17 = arith.mulf %14, %16 : vector<18x128xf32>
    %c0_10 = arith.constant 0 : index
    %c0_11 = arith.constant 0 : index
    %18 = vector.load %arg4[%c0_10, %c0_11] : memref<1x128xf32, #tpu.memory_space<vmem>>, vector<1x128xf32>
    %19 = vector.broadcast %18 : vector<1x128xf32> to vector<18x128xf32>
    %20 = arith.addf %17, %19 : vector<18x128xf32>
    %21 = arith.truncf %20 : vector<18x128xf32> to vector<18x128xbf16>
    %c0_12 = arith.constant 0 : index
    %c0_13 = arith.constant 0 : index
    %22 = vector.load %arg5[%c0_12, %c0_13] : memref<128x128xbf16, #tpu.memory_space<vmem>>, vector<128x128xbf16>
    %cst_14 = arith.constant dense<0.000000e+00> : vector<18x128xf32>
    %23 = tpu.matmul %21, %22, %cst_14 {dimension_numbers = #tpu.dot_dimension_numbers<[1], [0], [0], [1], [0, 0, 1, 1], [], []>} : vector<18x128xbf16>, vector<128x128xbf16>, vector<18x128xf32> -> vector<18x128xf32>
    %c0_15 = arith.constant 0 : index
    %c0_16 = arith.constant 0 : index
    %24 = vector.load %arg6[%c0_15, %c0_16] : memref<1x128xf32, #tpu.memory_space<vmem>>, vector<1x128xf32>
    %25 = vector.broadcast %24 : vector<1x128xf32> to vector<18x128xf32>
    %26 = arith.addf %23, %25 : vector<18x128xf32>
    %cst_17 = arith.constant 5.000000e-01 : f32
    %27 = vector.broadcast %cst_17 : f32 to vector<18x128xf32>
    %28 = arith.mulf %27, %26 : vector<18x128xf32>
    %cst_18 = arith.constant 0.707106769 : f32
    %29 = vector.broadcast %cst_18 : f32 to vector<18x128xf32>
    %30 = arith.mulf %26, %29 : vector<18x128xf32>
    %31 = math.erf %30 : vector<18x128xf32>
    %cst_19 = arith.constant 1.000000e+00 : f32
    %32 = vector.broadcast %cst_19 : f32 to vector<18x128xf32>
    %33 = arith.addf %32, %31 : vector<18x128xf32>
    %34 = arith.mulf %28, %33 : vector<18x128xf32>
    %c0_20 = arith.constant 0 : index
    %c0_21 = arith.constant 0 : index
    %35 = vector.load %arg7[%c0_20, %c0_21] : memref<1x128xf32, #tpu.memory_space<vmem>>, vector<1x128xf32>
    %36 = vector.broadcast %35 : vector<1x128xf32> to vector<18x128xf32>
    %37 = arith.mulf %34, %36 : vector<18x128xf32>
    %c0_22 = arith.constant 0 : index
    %c0_23 = arith.constant 0 : index
    %38 = vector.load %arg8[%c0_22, %c0_23] : memref<1x128xf32, #tpu.memory_space<vmem>>, vector<1x128xf32>
    %39 = vector.broadcast %38 : vector<1x128xf32> to vector<18x128xf32>
    %40 = arith.addf %37, %39 : vector<18x128xf32>
    %c0_24 = arith.constant 0 : index
    %c0_25 = arith.constant 0 : index
    %41 = vector.load %arg9[%c0_24, %c0_25] : memref<18x128xf32, #tpu.memory_space<vmem>>, vector<18x128xf32>
    tpu.vector_store %arg9[%c0_24, %c0_25], %40 {strides = array<i32>} : memref<18x128xf32, #tpu.memory_space<vmem>>, vector<18x128xf32>,
    return
  }
}

</mosaic_0001>

<bundles_post_ra>
// kernel: tpu_custom_call.1
= control target key start
LH: loop header
LB: loop body
LE: loop exit
PB: predicated region body
PF: predicated region fallthrough
CT: control target
= control target key end

     0   :  { %14 = vsyncpa [#allocation3], 0  ;;  %s691_s0 = inlined_call_operand.hbm [shape: f32[18,24], index: 0, kind: input, shape index: {}]   ;;  %s692_s1 = inlined_call_operand.hbm [shape: bf16[24,128], index: 1, kind: input, shape index: {}]   ;;  %s693_s2 = inlined_call_operand.vmem [shape: f32[1,128], index: 2, kind: input, shape index: {}]   ;;  %s694_s3 = inlined_call_operand.vmem [shape: f32[1,128], index: 3, kind: input, shape index: {}]   ;;  %s695_s4 = inlined_call_operand.vmem [shape: f32[1,128], index: 4, kind: input, shape index: {}]   ;;  %s696_s5 = inlined_call_operand.hbm [shape: bf16[128,128], index: 5, kind: input, shape index: {}]   ;;  %s697_s6 = inlined_call_operand.vmem [shape: f32[1,128], index: 6, kind: input, shape index: {}]   ;;  %s698_s7 = inlined_call_operand.vmem [shape: f32[1,128], index: 7, kind: input, shape index: {}]   ;;  %s699_s8 = inlined_call_operand.vmem [shape: f32[1,128], index: 8, kind: input, shape index: {}]   ;;  %s700_s9 = inlined_call_operand.hbm [shape: f32[18,128], index: 9, kind: output, shape index: {}]  }
   0x1   :  { %15 = vsyncpa [#allocation6], 0 }
   0x2   :  { %16 = vsyncpa [#allocation4], 0  ;;  %s555_s30 = smov [#allocation5]   ;;  %s461_s13 = scalar_lea.hbm %s692_s1, 192 }
   0x3   :  { %s34_s10 = sshll.u32 %s555_s30, 4  ;;  %p462_p0 = scmp.ne.s32.totalorder %s692_s1, %s461_s13  ;;  %s35_s10 = int_to_ptr.vmem [resolvable:$true] %s34_s10 }
   0x4   :  { %p465_p1 = scmp.lt.u32.totalorder %s461_s13, %s692_s1 }
   0x6   :  { %p467_p2 = pnand %p465_p1, %p462_p0 }
   0x8   :  { %470 = shalt.err (!%p467_p2)
}
   0x9   :  { %s471_s18 = scalar_lea.vmem %s35_s10, 192  ;;  %p476_p4 = scmp.lt.s32.totalorder %s35_s10, %s35_s10 }
   0xa   :  { %p472_p3 = scmp.ne.s32.totalorder %s35_s10, %s471_s18  ;;  %p477_p5 = scmp.lt.s32.totalorder %s471_s18, %s471_s18 }
   0xc   :  { %p478_p6 = por %p477_p5, %p476_p4 }
   0xe   :  { %p479_p7 = pnand %p478_p6, %p472_p3 }
  0x10   :  { %482 = shalt.err (!%p479_p7)
}
  0x11   :  { %s556_s19 = smov 64   ;;  %s557_s20 = smov 4  }
  0x12   :  { %40 = dma.hbm_to_vmem [thread:$0]  %s692_s1, 192, %s35_s10, [#allocation6], %s556_s19, %s556_s19, %s557_s20  }
  0x13   :  { %s558_s23 = smov [#allocation2]   ;;  %s483_s27 = scalar_lea.hbm %s691_s0, 384 }
  0x14   :  { %s22_s24 = sshll.u32 %s558_s23, 4  ;;  %p484_p8 = scmp.ne.s32.totalorder %s691_s0, %s483_s27  ;;  %s23_s24 = int_to_ptr.vmem [resolvable:$true] %s22_s24 }
  0x15   :  { %p487_p9 = scmp.lt.u32.totalorder %s483_s27, %s691_s0 }
  0x17   :  { %p489_p10 = pnand %p487_p9, %p484_p8 }
  0x19   :  { %492 = shalt.err (!%p489_p10)
}
  0x1a   :  { %s493_s12 = scalar_lea.vmem %s23_s24, 384  ;;  %p498_p12 = scmp.lt.s32.totalorder %s23_s24, %s23_s24 }
  0x1b   :  { %p494_p11 = scmp.ne.s32.totalorder %s23_s24, %s493_s12  ;;  %p499_p13 = scmp.lt.s32.totalorder %s493_s12, %s493_s12 }
  0x1d   :  { %p500_p0 = por %p499_p13, %p498_p12 }
  0x1f   :  { %p501_p1 = pnand %p500_p0, %p494_p11 }
  0x21   :  { %504 = shalt.err (!%p501_p1)
}
  0x22   :  { %s559_s1 = smov 128   ;;  %s560_s10 = smov 8  }
  0x23   :  { %28 = dma.hbm_to_vmem [thread:$0]  %s691_s0, 384, %s23_s24, [#allocation3], %s559_s1, %s559_s1, %s560_s10  }
  0x24   :  { %s561_s15 = smov [#allocation7]   ;;  %s505_s21 = scalar_lea.hbm %s696_s5, 1024 }
  0x25   :  { %s52_s16 = sshll.u32 %s561_s15, 4  ;;  %p506_p2 = scmp.ne.s32.totalorder %s696_s5, %s505_s21  ;;  %s53_s16 = int_to_ptr.vmem [resolvable:$true] %s52_s16 }
  0x26   :  { %p509_p3 = scmp.lt.u32.totalorder %s505_s21, %s696_s5 }
  0x28   :  { %p511_p4 = pnand %p509_p3, %p506_p2 }
  0x2a   :  { %514 = shalt.err (!%p511_p4)
}
  0x2b   :  { %s515_s27 = scalar_lea.vmem %s53_s16, 1024  ;;  %p520_p6 = scmp.lt.s32.totalorder %s53_s16, %s53_s16 }
  0x2c   :  { %p516_p5 = scmp.ne.s32.totalorder %s53_s16, %s515_s27  ;;  %p521_p7 = scmp.lt.s32.totalorder %s515_s27, %s515_s27 }
  0x2e   :  { %p522_p8 = por %p521_p7, %p520_p6 }
  0x30   :  { %p523_p9 = pnand %p522_p8, %p516_p5 }
  0x32   :  { %526 = shalt.err (!%p523_p9)
}
  0x33   :  { %58 = dma.hbm_to_vmem [thread:$0]  %s696_s5, 1024, %s53_s16, [#allocation6], %s556_s19, %s556_s19, %s557_s20  }
  0x34   :  { %549 = dma.done.wait [#allocation3], 384  }
  0x35   :  { %550 = vsyncadd [#allocation3], 4294966912 }
  0x36   :  { %551 = dma.done.wait [#allocation6], 1216  }
  0x37   :  { %552 = vsyncadd [#allocation6], 4294966080  ;;  %v439_v0 = vld [vmem:[#allocation5] sm:$0xff]   ;;  %vm106_vm0 = vcmask 1043456   ;;  %v440_v1 = vld [vmem:[#allocation5 + $0x8] ss:$0 sps:$4 sm:$0xff]  }
  0x38   :  { %v75_v2 = vld [vmem:[#allocation2] sm:$0xff]  ;;  %402 = vmatprep.subr.bf16.mxu0 %v439_v0  ;;  %v76_v3 = vld [vmem:[#allocation2 + $0x8] sm:$0xff]  ;;  %vm99_vm1 = vcmask 195584   ;;  %v77_v4 = vld [vmem:[#allocation2 + $0x10] sm:$0x3]  ;;  %v108_v5 = vsel %vm106_vm0, %v440_v1, 0 }
  0x39   :  { %403 = vmatpush3.bf16.msra.mxu0 %v439_v0  ;;  %v78_v6 = vpack.c.bf16 %v76_v3, %v75_v2  ;;  %v441_v7 = vld [vmem:[#allocation7] sm:$0xff]   ;;  %v79_v8 = vpack.c.bf16 %v77_v4, %v77_v4  ;;  %v442_v9 = vld [vmem:[#allocation7 + $0x8] sm:$0xff]   ;;  %v443_v10 = vld [vmem:[#allocation7 + $0x10] sm:$0xff]   ;;  %s562_s13 = smov [#allocation8]  }
  0x3a   :  { %430 = vmatprep.subr.msk.bf16.mxu0 %vm106_vm0, %v440_v1  ;;  %410 = vmatprep.subr.bf16.mxu1 %v441_v7  ;;  %v444_v11 = vld [vmem:[#allocation7 + $0x18] sm:$0xff]   ;;  %v445_v12 = vld [vmem:[#allocation7 + $0x20] sm:$0xff]   ;;  %v446_v13 = vld [vmem:[#allocation7 + $0x28] sm:$0xff]   ;;  %s357_s14 = sshll.u32 %s562_s13, 4  ;;  %s358_s14 = int_to_ptr.vmem [resolvable:$true] %s357_s14 }
  0x3b   :  { %406 = vmatprep.mubr.msk.bf16.mxu0 %vm99_vm1, %v78_v6  ;;  %411 = vmatpush3.bf16.msra.mxu1 %v441_v7  ;;  %v447_v14 = vld [vmem:[#allocation7 + $0x30] sm:$0xff]   ;;  %v448_v15 = vld [vmem:[#allocation7 + $0x38] sm:$0xff]   ;;  %p532_p11 = scmp.lt.s32.totalorder %s358_s14, %s358_s14 }
  0x3c   :  { %412 = vmatprep.subr.bf16.mxu1 %v442_v9  ;;  %v370_v16 = vld [vmem:[%s693_s2] ss:$0 sm:$0xff] }
  0x3d   :  { %405 = vmatpush3.bf16.msra.mxu0 %v108_v5  ;;  %v375_v33 = vld [vmem:[%s694_s3] ss:$0 sm:$0xff] }
  0x3e   :  { %v376_v42 = vld [vmem:[%s695_s4] ss:$0 sm:$0xff] }
  0x3f   :  { %413 = vmatpush3.bf16.msra.mxu1 %v442_v9  ;;  %v377_v49 = vld [vmem:[%s697_s6] ss:$0 sm:$0xff] }
  0x40   :  { %407 = vmatmul.mubr.msk.bf16.vlgmr.msra.gmra.mrb[0].mxu0 %vm99_vm1, %v79_v8  ;;  %414 = vmatprep.subr.bf16.mxu1 %v443_v10  ;;  %v386_v0 = vld [vmem:[%s698_s7] ss:$0 sm:$0xff]  ;;  %s527_s7 = scalar_lea.vmem %s358_s14, 384 }
  0x41   :  { %v387_v8 = vld [vmem:[%s699_s8] ss:$0 sm:$0xff]  ;;  %p528_p10 = scmp.ne.s32.totalorder %s358_s14, %s527_s7  ;;  %p533_p12 = scmp.lt.s32.totalorder %s527_s7, %s527_s7 }
  0x43   :  { %415 = vmatpush3.bf16.msra.mxu1 %v443_v10  ;;  %p534_p13 = por %p533_p12, %p532_p11 }
  0x44   :  { %416 = vmatprep.subr.bf16.mxu1 %v444_v11 }
  0x45   :  { %p535_p0 = pnand %p534_p13, %p528_p10 }
  0x47   :  { %417 = vmatpush3.bf16.msra.mxu1 %v444_v11 }
  0x48   :  { %418 = vmatprep.subr.bf16.mxu1 %v445_v12 }
  0x4b   :  { %419 = vmatpush3.bf16.msra.mxu1 %v445_v12 }
  0x4c   :  { %420 = vmatprep.subr.bf16.mxu1 %v446_v13 }
  0x4f   :  { %421 = vmatpush3.bf16.msra.mxu1 %v446_v13 }
  0x50   :  { %422 = vmatprep.subr.bf16.mxu1 %v447_v14 }
  0x53   :  { %423 = vmatpush3.bf16.msra.mxu1 %v447_v14 }
  0x54   :  { %424 = vmatprep.subr.bf16.mxu1 %v448_v15 }
  0x57   :  { %425 = vmatpush3.bf16.msra.mxu1 %v448_v15 }
 0x113   :  { %v408_v17 = vpop.f32.mrb[0].mxu0 }
 0x114   :  { %v153_v18 = vadd.f32 %v408_v17, %v370_v16  ;;  %v144_v19 = vpop.f32.mrb[1].mxu0 }
 0x115   :  { %v145_v20 = vadd.f32 %v370_v16, %v144_v19  ;;  %v409_v21 = vpop.f32.mrb[2].mxu0 }
 0x116   :  { %v163_v22 = vmul.f32 0.70710677, %v153_v18  ;;  %v147_v23 = vpop.f32.mrb[3].mxu0  ;;  %v160_v29 = vmul.f32 0.5, %v153_v18 }
 0x117   :  { %v161_v24 = vmul.f32 0.70710677, %v145_v20  ;;  %v148_v25 = vadd.f32 %v370_v16, %v147_v23  ;;  %v158_v31 = vmul.f32 0.5, %v145_v20 }
 0x118   :  { %449 = verf.f32 %v163_v22 }
 0x119   :  { %451 = verf.f32 %v161_v24  ;;  %v162_v26 = vmul.f32 0.70710677, %v148_v25  ;;  %v159_v37 = vmul.f32 0.5, %v148_v25 }
 0x11b   :  { %453 = verf.f32 %v162_v26 }
 0x122   :  { %v450_v27 = vpop.eup %449 }
 0x123   :  { %v452_v28 = vpop.eup %451  ;;  %v169_v30 = vadd.f32 1.0, %v450_v27 }
 0x124   :  { %v167_v32 = vadd.f32 1.0, %v452_v28 }
 0x125   :  { %v454_v34 = vpop.eup %453  ;;  %v172_v35 = vmul.f32 %v169_v30, %v160_v29 }
 0x126   :  { %v170_v36 = vmul.f32 %v167_v32, %v158_v31  ;;  %v168_v38 = vadd.f32 1.0, %v454_v34 }
 0x127   :  { %v182_v39 = vmul.f32 %v375_v33, %v172_v35 }
 0x128   :  { %v171_v40 = vmul.f32 %v168_v38, %v159_v37  ;;  %v180_v41 = vmul.f32 %v375_v33, %v170_v36 }
 0x129   :  { %v192_v44 = vadd.f32 %v376_v42, %v182_v39 }
 0x12a   :  { %v181_v43 = vmul.f32 %v375_v33, %v171_v40  ;;  %v190_v45 = vadd.f32 %v376_v42, %v180_v41 }
 0x12b   :  { %v194_v48 = vpack.c.bf16 %v192_v44, %v192_v44 }
 0x12c   :  { %v191_v46 = vadd.f32 %v376_v42, %v181_v43 }
 0x12e   :  { %v193_v47 = vpack.c.bf16 %v191_v46, %v190_v45 }
 0x130   :  { %426 = vmatprep.mubr.bf16.mxu1 %v193_v47 }
 0x131   :  { %427 = vmatmul.mubr.bf16.vlgmr.msra.gmra.mrb[0].mxu1 %v194_v48 }
 0x204   :  { %v428_v50 = vpop.f32.mrb[0].mxu1 }
 0x205   :  { %v309_v51 = vadd.f32 %v428_v50, %v377_v49  ;;  %v300_v52 = vpop.f32.mrb[1].mxu1 }
 0x206   :  { %v301_v53 = vadd.f32 %v377_v49, %v300_v52  ;;  %v429_v54 = vpop.f32.mrb[2].mxu1 }
 0x207   :  { %v319_v55 = vmul.f32 0.70710677, %v309_v51  ;;  %v303_v56 = vpop.f32.mrb[3].mxu1  ;;  %v316_v62 = vmul.f32 0.5, %v309_v51 }
 0x208   :  { %v317_v57 = vmul.f32 0.70710677, %v301_v53  ;;  %v304_v58 = vadd.f32 %v377_v49, %v303_v56  ;;  %v314_v1 = vmul.f32 0.5, %v301_v53 }
 0x209   :  { %455 = verf.f32 %v319_v55 }
 0x20a   :  { %457 = verf.f32 %v317_v57  ;;  %v318_v59 = vmul.f32 0.70710677, %v304_v58  ;;  %v315_v6 = vmul.f32 0.5, %v304_v58 }
 0x20c   :  { %459 = verf.f32 %v318_v59 }
 0x213   :  { %v456_v60 = vpop.eup %455 }
 0x214   :  { %v458_v61 = vpop.eup %457  ;;  %v325_v63 = vadd.f32 1.0, %v456_v60 }
 0x215   :  { %v323_v2 = vadd.f32 1.0, %v458_v61 }
 0x216   :  { %v460_v3 = vpop.eup %459  ;;  %v328_v4 = vmul.f32 %v325_v63, %v316_v62 }
 0x217   :  { %v326_v5 = vmul.f32 %v323_v2, %v314_v1  ;;  %v324_v7 = vadd.f32 1.0, %v460_v3 }
 0x218   :  { %v338_v9 = vmul.f32 %v386_v0, %v328_v4 }
 0x219   :  { %v336_v10 = vmul.f32 %v386_v0, %v326_v5  ;;  %v327_v11 = vmul.f32 %v324_v7, %v315_v6 }
 0x21a   :  { %v348_v12 = vadd.f32 %v387_v8, %v338_v9 }
 0x21b   :  { %v337_v13 = vmul.f32 %v386_v0, %v327_v11  ;;  %v346_v14 = vadd.f32 %v387_v8, %v336_v10 }
 0x21c   :  { %351 = vst [vmem:[#allocation8 + $0x10] sm:$0x3] %v348_v12 }
 0x21d   :  { %v347_v15 = vadd.f32 %v387_v8, %v337_v13  ;;  %349 = vst [vmem:[#allocation8] sm:$0xff] %v346_v14 }
 0x21f   :  { %350 = vst [vmem:[#allocation8 + $0x8] sm:$0xff] %v347_v15 }
 0x220   :  { %538 = shalt.err (!%p535_p0)
}
 0x221   :  { %s539_s16 = scalar_lea.hbm %s700_s9, 384 }
 0x222   :  { %p540_p1 = scmp.ne.s32.totalorder %s700_s9, %s539_s16  ;;  %p543_p2 = scmp.lt.u32.totalorder %s539_s16, %s700_s9 }
 0x224   :  { %p545_p3 = pnand %p543_p2, %p540_p1 }
 0x226   :  { %548 = shalt.err (!%p545_p3)
}
 0x227   :  { %363 = dma.vmem_to_hbm [thread:$0]  %s358_s14, 384, %s700_s9, [#allocation4], %s559_s1, %s559_s1, %s560_s10  }
 0x228   :  { %553 = dma.done.wait [#allocation4], 384  }
 0x229   :  { %554 = vsyncadd [#allocation4], 4294966912 }
 0x22a   :  { %367 = vsyncpa [#allocation3], 1 }
 0x22b   :  { %368 = vsyncpa [#allocation6], 1 }
 0x22c   :  { %369 = vsyncpa [#allocation4], 1 }

</bundles_post_ra>
